<compile_context>
chip_gen: v5e
topology: v5e:2x2
jax: 0.10.0
libtpu: 0.0.40
codegen_flags: <defaults>
</compile_context>

<pallas_src>
import functools
import math

import jax
import jax.numpy as jnp
import numpy as np
from jax import lax
from jax.experimental import pallas as pl
from jax.experimental.pallas import tpu as pltpu


# ----------------------------- Pallas kernel ------------------------------ #
def _bilstm_block_kernel(len_ref, xp_ref, whh_ref, y_ref, h_sc, c_sc,
                         *, Tb, H, NTB):
    """One (direction, time-block) grid step of a bidirectional LSTM layer.

    Grid: (2, NTB).  Axis 0 = direction (0 fwd, 1 bwd; "parallel" -> may be
    sharded across TensorCores).  Axis 1 = time block ("arbitrary",
    sequential; recurrent state carried in VMEM scratch).

    len_ref : (B, 1)   int32 sequence lengths (constant block index -> resident)
    xp_ref  : (Tb, B, 4H) hoisted input projection x@W_ih + b for this block
    whh_ref : (H, 4H)  recurrent weights of this direction
    y_ref   : (Tb, B, H) output hidden states (zero at padded positions)
    h_sc/c_sc : (B, H) recurrent state across time blocks; within a block the
                state is carried as fori_loop values (vregs).
    """
    d = pl.program_id(0)
    tb = pl.program_id(1)

    @pl.when(tb == 0)
    def _():
        h_sc[...] = jnp.zeros_like(h_sc)
        c_sc[...] = jnp.zeros_like(c_sc)

    # first global timestep covered by this block (bwd walks blocks reversed)
    t_base = (tb + d * (NTB - 1 - 2 * tb)) * Tb
    lens = len_ref[...]            # (B, 1) int32
    whh = whh_ref[...]             # (H, 4H)

    def step(s, carry):
        h, c = carry
        lt = s + d * (Tb - 1 - 2 * s)            # local time, reversed for bwd
        gt = t_base + lt                          # global timestep
        m = (gt < lens).astype(jnp.float32)       # (B, 1) validity mask

        # only the small recurrent matmul remains on the serial critical path
        # (default MXU precision: bf16 operands, f32 accumulate)
        gates = xp_ref[lt] + jnp.dot(h, whh, preferred_element_type=jnp.float32)

        # TODO(synk): for production H (multiple of 128) reorganize weights so
        # the gate split is lane-aligned; at H=32 this lane slicing is cheap.
        i_g = jax.nn.sigmoid(gates[:, 0 * H:1 * H])
        f_g = jax.nn.sigmoid(gates[:, 1 * H:2 * H])
        g_g = jnp.tanh(gates[:, 2 * H:3 * H])
        o_g = jax.nn.sigmoid(gates[:, 3 * H:4 * H])

        c_new = f_g * c + i_g * g_g
        h_new = o_g * jnp.tanh(c_new)

        # packed-sequence semantics: don't advance state at padded positions,
        # and padded output positions stay zero (pad_packed_sequence).
        c = m * c_new + (1.0 - m) * c
        h = m * h_new + (1.0 - m) * h
        y_ref[lt] = (m * h_new).astype(y_ref.dtype)
        return h, c

    h, c = lax.fori_loop(0, Tb, step, (h_sc[...], c_sc[...]), unroll=True)
    h_sc[...] = h
    c_sc[...] = c


def run_bilstm_layer(x_tbh, lengths_b1, w_ih, w_hh, bias, *, time_block=4):
    """One bidirectional LSTM layer.

    x_tbh : (T, B, Hin) time-major layer input
    w_ih  : (2, Hin, 4H), w_hh : (2, H, 4H), bias : (2, 4H)  (dirs stacked)
    Returns (2, T, B, H) per-direction hidden states.
    """
    T, B, Hin = x_tbh.shape
    H = w_hh.shape[1]

    # Hoisted input projection: one large MXU-friendly matmul per layer,
    # bias folded in, out of the serial recurrence.
    xp = jnp.einsum("tbi,dif->dtbf", x_tbh, w_ih,
                    preferred_element_type=jnp.float32)
    xp = xp + bias[:, None, None, :]                       # (2, T, B, 4H)

    Tb = min(time_block, T)
    NTB = pl.cdiv(T, Tb)
    T_pad = NTB * Tb
    if T_pad != T:
        xp = jnp.pad(xp, ((0, 0), (0, T_pad - T), (0, 0), (0, 0)))

    kernel = functools.partial(_bilstm_block_kernel, Tb=Tb, H=H, NTB=NTB)

    def t_map(di, tbi):
        # fwd walks time blocks left->right, bwd right->left
        return (di, tbi + di * (NTB - 1 - 2 * tbi), 0, 0)

    y = pl.pallas_call(
        kernel,
        out_shape=jax.ShapeDtypeStruct((2, T_pad, B, H), jnp.float32),
        grid_spec=pltpu.PrefetchScalarGridSpec(
            num_scalar_prefetch=0,
            grid=(2, NTB),
            in_specs=[
                pl.BlockSpec((B, 1), lambda di, tbi: (0, 0)),          # lengths
                pl.BlockSpec((None, Tb, B, 4 * H), t_map),             # x proj
                pl.BlockSpec((None, H, 4 * H), lambda di, tbi: (di, 0, 0)),
            ],
            out_specs=pl.BlockSpec((None, Tb, B, H), t_map),
            scratch_shapes=[
                pltpu.VMEM((B, H), jnp.float32),   # h state
                pltpu.VMEM((B, H), jnp.float32),   # c state
            ],
        ),
        compiler_params=pltpu.CompilerParams(
            dimension_semantics=("parallel", "arbitrary")),
    )(lengths_b1, xp, w_hh)

    return y[:, :T]                                         # (2, T, B, H)


# ------------------------------ Model wrapper ------------------------------ #
def init_params(key, vocab_size, hidden_dim, num_layers):
    H = hidden_dim
    params = {}
    key, k_emb = jax.random.split(key)
    emb = jax.random.normal(k_emb, (vocab_size + 1, H), jnp.float32)
    emb = emb.at[0].set(0.0)  # padding_idx=0
    params["embedding"] = emb

    bound = 1.0 / math.sqrt(H)
    for l in range(num_layers):
        Hin = H if l == 0 else 2 * H
        key, k1, k2, k3, k4 = jax.random.split(key, 5)
        params[f"l{l}_w_ih"] = jax.random.uniform(
            k1, (2, Hin, 4 * H), jnp.float32, -bound, bound)
        params[f"l{l}_w_hh"] = jax.random.uniform(
            k2, (2, H, 4 * H), jnp.float32, -bound, bound)
        params[f"l{l}_b"] = (
            jax.random.uniform(k3, (2, 4 * H), jnp.float32, -bound, bound)
            + jax.random.uniform(k4, (2, 4 * H), jnp.float32, -bound, bound))
    return params


def rnn_forward(tokens, coords, padding_mask, params, *, hidden_dim,
                num_layers, time_block=4):
    """Mirrors RNN.forward; returns the static-T (B, T, 2*hidden_dim) output.

    (The PyTorch module returns the output sliced to max(seq_len); that slice
    is done by the caller so this function stays fully jittable.)
    """
    del coords  # unused by the PyTorch forward as well
    B, T = tokens.shape

    emb = jnp.take(params["embedding"], tokens, axis=0)          # (B, T, H)
    lengths = jnp.sum(padding_mask.astype(jnp.int32), axis=1)    # (B,)
    lengths_b1 = lengths[:, None].astype(jnp.int32)              # (B, 1)

    x = jnp.transpose(emb, (1, 0, 2)).astype(jnp.float32)        # (T, B, H)

    for l in range(num_layers):
        y = run_bilstm_layer(
            x, lengths_b1, params[f"l{l}_w_ih"], params[f"l{l}_w_hh"],
            params[f"l{l}_b"], time_block=time_block)
        x = jnp.concatenate([y[0], y[1]], axis=-1)               # (T, B, 2H)

    return jnp.transpose(x, (1, 0, 2))                           # (B, T, 2H)


# --------------------------- Pure-numpy reference --------------------------- #
def _sigmoid(x):
    return 1.0 / (1.0 + np.exp(-x))


def ref_forward(tokens, padding_mask, params, *, hidden_dim, num_layers):
    H = hidden_dim
    tokens = np.asarray(tokens)
    pm = np.asarray(padding_mask)
    B, T = tokens.shape
    lengths = pm.astype(np.int64).sum(axis=1)
    x = np.asarray(params["embedding"])[tokens].astype(np.float32)  # (B,T,H)

    for l in range(num_layers):
        outs = []
        for d, rev in ((0, False), (1, True)):
            w_ih = np.asarray(params[f"l{l}_w_ih"])[d]
            w_hh = np.asarray(params[f"l{l}_w_hh"])[d]
            b = np.asarray(params[f"l{l}_b"])[d]
            y = np.zeros((B, T, H), np.float32)
            for bi in range(B):
                L = int(lengths[bi])
                h = np.zeros(H, np.float32)
                c = np.zeros(H, np.float32)
                trange = range(L - 1, -1, -1) if rev else range(L)
                for t in trange:
                    g = x[bi, t] @ w_ih + h @ w_hh + b
                    i_g = _sigmoid(g[0 * H:1 * H])
                    f_g = _sigmoid(g[1 * H:2 * H])
                    g_g = np.tanh(g[2 * H:3 * H])
                    o_g = _sigmoid(g[3 * H:4 * H])
                    c = f_g * c + i_g * g_g
                    h = o_g * np.tanh(c)
                    y[bi, t] = h
            outs.append(y)
        x = np.concatenate(outs, axis=-1)
    tmax = int(lengths.max())
    return x[:, :tmax, :]


# ---------------------------------- Main ----------------------------------- #
if __name__ == "__main__":
    vocab_size = 20
    hidden_dim = 32
    num_layers = 2
    B, T = 2, 8

    key = jax.random.PRNGKey(0)
    params = init_params(key, vocab_size, hidden_dim, num_layers)

    # deterministic example inputs
    key_tok, _ = jax.random.split(jax.random.PRNGKey(0))
    lengths_np = np.array([8, 5], dtype=np.int32)
    tokens_np = np.asarray(
        jax.random.randint(key_tok, (B, T), 1, vocab_size + 1), dtype=np.int32)
    padding_mask_np = (np.arange(T)[None, :] < lengths_np[:, None]).astype(np.float32)
    tokens_np = tokens_np * padding_mask_np.astype(np.int32)  # pad token = 0

    tokens = jnp.asarray(tokens_np)
    padding_mask = jnp.asarray(padding_mask_np)
    coords = jax.random.normal(jax.random.PRNGKey(1), (B, T, 3), jnp.float32)

    fwd = jax.jit(functools.partial(
        rnn_forward, hidden_dim=hidden_dim, num_layers=num_layers))
    out = jax.block_until_ready(fwd(tokens, coords, padding_mask, params))

    ref = ref_forward(tokens_np, padding_mask_np, params,
                      hidden_dim=hidden_dim, num_layers=num_layers)

    # pad_packed_sequence pads only to the max length in the batch
    tmax = int(lengths_np.max())
    out_np = np.asarray(out)[:, :tmax, :]
    assert out_np.shape == ref.shape, (out_np.shape, ref.shape)
    # matmuls now run at default MXU precision (bf16 operands, f32 accumulate)
    # per the perf review, so the tolerance vs the f32 reference is relaxed.
    np.testing.assert_allclose(out_np, ref, rtol=2e-2, atol=2e-2)
    print("KERNEL_OK")
</pallas_src>

<mosaic_0001>
module attributes {stable_mosaic.version = 11 : i64} {
  func.func @_bilstm_block_kernel(%arg0: i32, %arg1: i32, %arg2: memref<2x1xi32, #tpu.memory_space<vmem>>, %arg3: memref<1x4x2x128xf32, #tpu.memory_space<vmem>>, %arg4: memref<1x32x128xf32, #tpu.memory_space<vmem>>, %arg5: memref<1x4x2x32xf32, #tpu.memory_space<vmem>>, %arg6: memref<2x32xf32, #tpu.memory_space<vmem>>, %arg7: memref<2x32xf32, #tpu.memory_space<vmem>>) attributes {dimension_semantics = [#tpu.dimension_semantics<parallel>, #tpu.dimension_semantics<arbitrary>], iteration_bounds = array<i64: 2, 2>, scalar_prefetch = 0 : i64, scratch_operands = 2 : i64, tpu.core_type = #tpu.core_type<tc>, window_params = [{pipeline_mode = #tpu.pipeline_mode<synchronous>, transform_indices = @transform_0, window_bounds = array<i64: 2, 1>}, {transform_indices = @transform_1, window_bounds = array<i64: 1, 4, 2, 128>}, {transform_indices = @transform_2, window_bounds = array<i64: 1, 32, 128>}, {transform_indices = @transform_3, window_bounds = array<i64: 1, 4, 2, 32>}]} {
    %c0_i32 = arith.constant 0 : i32
    %0 = arith.cmpi eq, %arg1, %c0_i32 : i32
    %1 = arith.extui %0 : i1 to i32
    %c0_i32_0 = arith.constant 0 : i32
    %2 = arith.cmpi ne, %1, %c0_i32_0 : i32
    scf.if %2 {
      %cst_72 = arith.constant 0.000000e+00 : f32
      %251 = vector.broadcast %cst_72 : f32 to vector<2x32xf32>
      %c0_73 = arith.constant 0 : index
      %c0_74 = arith.constant 0 : index
      %252 = vector.load %arg6[%c0_73, %c0_74] : memref<2x32xf32, #tpu.memory_space<vmem>>, vector<2x32xf32>
      tpu.vector_store %arg6[%c0_73, %c0_74], %251 {strides = array<i32>} : memref<2x32xf32, #tpu.memory_space<vmem>>, vector<2x32xf32>,
      %cst_75 = arith.constant 0.000000e+00 : f32
      %253 = vector.broadcast %cst_75 : f32 to vector<2x32xf32>
      %c0_76 = arith.constant 0 : index
      %c0_77 = arith.constant 0 : index
      %254 = vector.load %arg7[%c0_76, %c0_77] : memref<2x32xf32, #tpu.memory_space<vmem>>, vector<2x32xf32>
      tpu.vector_store %arg7[%c0_76, %c0_77], %253 {strides = array<i32>} : memref<2x32xf32, #tpu.memory_space<vmem>>, vector<2x32xf32>,
    } else {
    }
    %c2_i32 = arith.constant 2 : i32
    %3 = arith.muli %c2_i32, %arg1 : i32
    %c1_i32 = arith.constant 1 : i32
    %4 = arith.subi %c1_i32, %3 : i32
    %5 = arith.muli %arg0, %4 : i32
    %6 = arith.addi %arg1, %5 : i32
    %c4_i32 = arith.constant 4 : i32
    %7 = arith.muli %6, %c4_i32 : i32
    %c0 = arith.constant 0 : index
    %c0_1 = arith.constant 0 : index
    %8 = vector.load %arg2[%c0, %c0_1] : memref<2x1xi32, #tpu.memory_space<vmem>>, vector<2x1xi32>
    %c0_2 = arith.constant 0 : index
    %c0_3 = arith.constant 0 : index
    %c0_4 = arith.constant 0 : index
    %9 = vector.load %arg4[%c0_2, %c0_3, %c0_4] : memref<1x32x128xf32, #tpu.memory_space<vmem>>, vector<1x32x128xf32>
    %10 = vector.shape_cast %9 : vector<1x32x128xf32> to vector<32x128xf32>
    %c0_5 = arith.constant 0 : index
    %c0_6 = arith.constant 0 : index
    %11 = vector.load %arg6[%c0_5, %c0_6] : memref<2x32xf32, #tpu.memory_space<vmem>>, vector<2x32xf32>
    %c0_7 = arith.constant 0 : index
    %c0_8 = arith.constant 0 : index
    %12 = vector.load %arg7[%c0_7, %c0_8] : memref<2x32xf32, #tpu.memory_space<vmem>>, vector<2x32xf32>
    %c0_i32_9 = arith.constant 0 : i32
    %c2_i32_10 = arith.constant 2 : i32
    %13 = arith.muli %c2_i32_10, %c0_i32_9 : i32
    %c3_i32 = arith.constant 3 : i32
    %14 = arith.subi %c3_i32, %13 : i32
    %15 = arith.muli %arg0, %14 : i32
    %16 = arith.addi %c0_i32_9, %15 : i32
    %17 = arith.addi %7, %16 : i32
    %18 = vector.broadcast %17 : i32 to vector<2x1xi32>
    %19 = arith.cmpi slt, %18, %8 : vector<2x1xi32>
    %20 = arith.extui %19 : vector<2x1xi1> to vector<2x1xi32>
    %21 = arith.sitofp %20 : vector<2x1xi32> to vector<2x1xf32>
    %c0_11 = arith.constant 0 : index
    %22 = arith.index_cast %16 : i32 to index
    %c0_12 = arith.constant 0 : index
    %c0_13 = arith.constant 0 : index
    %23 = vector.load %arg3[%c0_11, %22, %c0_12, %c0_13] : memref<1x4x2x128xf32, #tpu.memory_space<vmem>>, vector<1x1x2x128xf32>
    %24 = vector.shape_cast %23 : vector<1x1x2x128xf32> to vector<2x128xf32>
    %cst = arith.constant dense<0.000000e+00> : vector<2x128xf32>
    %25 = tpu.matmul %11, %10, %cst {dimension_numbers = #tpu.dot_dimension_numbers<[1], [0], [0], [1], [0, 0, 1, 1], [], []>} : vector<2x32xf32>, vector<32x128xf32>, vector<2x128xf32> -> vector<2x128xf32>
    %26 = arith.addf %24, %25 : vector<2x128xf32>
    %27 = vector.extract_strided_slice %26 {offsets = [0, 0], sizes = [2, 32], strides = [1, 1]} : vector<2x128xf32> to vector<2x32xf32>
    %28 = arith.negf %27 : vector<2x32xf32>
    %29 = math.exp %28 : vector<2x32xf32>
    %cst_14 = arith.constant 1.000000e+00 : f32
    %30 = vector.broadcast %cst_14 : f32 to vector<2x32xf32>
    %31 = arith.addf %30, %29 : vector<2x32xf32>
    %32 = arith.divf %30, %31 : vector<2x32xf32>
    %33 = vector.extract_strided_slice %26 {offsets = [0, 32], sizes = [2, 32], strides = [1, 1]} : vector<2x128xf32> to vector<2x32xf32>
    %34 = arith.negf %33 : vector<2x32xf32>
    %35 = math.exp %34 : vector<2x32xf32>
    %cst_15 = arith.constant 1.000000e+00 : f32
    %36 = vector.broadcast %cst_15 : f32 to vector<2x32xf32>
    %37 = arith.addf %36, %35 : vector<2x32xf32>
    %38 = arith.divf %36, %37 : vector<2x32xf32>
    %39 = vector.extract_strided_slice %26 {offsets = [0, 64], sizes = [2, 32], strides = [1, 1]} : vector<2x128xf32> to vector<2x32xf32>
    %40 = math.tanh %39 : vector<2x32xf32>
    %41 = vector.extract_strided_slice %26 {offsets = [0, 96], sizes = [2, 32], strides = [1, 1]} : vector<2x128xf32> to vector<2x32xf32>
    %42 = arith.negf %41 : vector<2x32xf32>
    %43 = math.exp %42 : vector<2x32xf32>
    %cst_16 = arith.constant 1.000000e+00 : f32
    %44 = vector.broadcast %cst_16 : f32 to vector<2x32xf32>
    %45 = arith.addf %44, %43 : vector<2x32xf32>
    %46 = arith.divf %44, %45 : vector<2x32xf32>
    %47 = arith.mulf %38, %12 : vector<2x32xf32>
    %48 = arith.mulf %32, %40 : vector<2x32xf32>
    %49 = arith.addf %47, %48 : vector<2x32xf32>
    %50 = math.tanh %49 : vector<2x32xf32>
    %51 = arith.mulf %46, %50 : vector<2x32xf32>
    %52 = vector.broadcast %21 : vector<2x1xf32> to vector<2x32xf32>
    %53 = arith.mulf %52, %49 : vector<2x32xf32>
    %cst_17 = arith.constant 1.000000e+00 : f32
    %54 = vector.broadcast %cst_17 : f32 to vector<2x1xf32>
    %55 = arith.subf %54, %21 : vector<2x1xf32>
    %56 = vector.broadcast %55 : vector<2x1xf32> to vector<2x32xf32>
    %57 = arith.mulf %56, %12 : vector<2x32xf32>
    %58 = arith.addf %53, %57 : vector<2x32xf32>
    %59 = vector.broadcast %21 : vector<2x1xf32> to vector<2x32xf32>
    %60 = arith.mulf %59, %51 : vector<2x32xf32>
    %cst_18 = arith.constant 1.000000e+00 : f32
    %61 = vector.broadcast %cst_18 : f32 to vector<2x1xf32>
    %62 = arith.subf %61, %21 : vector<2x1xf32>
    %63 = vector.broadcast %62 : vector<2x1xf32> to vector<2x32xf32>
    %64 = arith.mulf %63, %11 : vector<2x32xf32>
    %65 = arith.addf %60, %64 : vector<2x32xf32>
    %66 = vector.broadcast %21 : vector<2x1xf32> to vector<2x32xf32>
    %67 = arith.mulf %66, %51 : vector<2x32xf32>
    %c0_19 = arith.constant 0 : index
    %68 = arith.index_cast %16 : i32 to index
    %c0_20 = arith.constant 0 : index
    %c0_21 = arith.constant 0 : index
    %69 = vector.load %arg5[%c0_19, %68, %c0_20, %c0_21] : memref<1x4x2x32xf32, #tpu.memory_space<vmem>>, vector<1x1x2x32xf32>
    %70 = vector.shape_cast %69 : vector<1x1x2x32xf32> to vector<2x32xf32>
    %71 = vector.shape_cast %67 : vector<2x32xf32> to vector<1x1x2x32xf32>
    tpu.vector_store %arg5[%c0_19, %68, %c0_20, %c0_21], %71 {strides = array<i32>} : memref<1x4x2x32xf32, #tpu.memory_space<vmem>>, vector<1x1x2x32xf32>,
    %c1_i32_22 = arith.constant 1 : i32
    %c2_i32_23 = arith.constant 2 : i32
    %72 = arith.muli %c2_i32_23, %c1_i32_22 : i32
    %c3_i32_24 = arith.constant 3 : i32
    %73 = arith.subi %c3_i32_24, %72 : i32
    %74 = arith.muli %arg0, %73 : i32
    %75 = arith.addi %c1_i32_22, %74 : i32
    %76 = arith.addi %7, %75 : i32
    %77 = vector.broadcast %76 : i32 to vector<2x1xi32>
    %78 = arith.cmpi slt, %77, %8 : vector<2x1xi32>
    %79 = arith.extui %78 : vector<2x1xi1> to vector<2x1xi32>
    %80 = arith.sitofp %79 : vector<2x1xi32> to vector<2x1xf32>
    %c0_25 = arith.constant 0 : index
    %81 = arith.index_cast %75 : i32 to index
    %c0_26 = arith.constant 0 : index
    %c0_27 = arith.constant 0 : index
    %82 = vector.load %arg3[%c0_25, %81, %c0_26, %c0_27] : memref<1x4x2x128xf32, #tpu.memory_space<vmem>>, vector<1x1x2x128xf32>
    %83 = vector.shape_cast %82 : vector<1x1x2x128xf32> to vector<2x128xf32>
    %cst_28 = arith.constant dense<0.000000e+00> : vector<2x128xf32>
    %84 = tpu.matmul %65, %10, %cst_28 {dimension_numbers = #tpu.dot_dimension_numbers<[1], [0], [0], [1], [0, 0, 1, 1], [], []>} : vector<2x32xf32>, vector<32x128xf32>, vector<2x128xf32> -> vector<2x128xf32>
    %85 = arith.addf %83, %84 : vector<2x128xf32>
    %86 = vector.extract_strided_slice %85 {offsets = [0, 0], sizes = [2, 32], strides = [1, 1]} : vector<2x128xf32> to vector<2x32xf32>
    %87 = arith.negf %86 : vector<2x32xf32>
    %88 = math.exp %87 : vector<2x32xf32>
    %cst_29 = arith.constant 1.000000e+00 : f32
    %89 = vector.broadcast %cst_29 : f32 to vector<2x32xf32>
    %90 = arith.addf %89, %88 : vector<2x32xf32>
    %91 = arith.divf %89, %90 : vector<2x32xf32>
    %92 = vector.extract_strided_slice %85 {offsets = [0, 32], sizes = [2, 32], strides = [1, 1]} : vector<2x128xf32> to vector<2x32xf32>
    %93 = arith.negf %92 : vector<2x32xf32>
    %94 = math.exp %93 : vector<2x32xf32>
    %cst_30 = arith.constant 1.000000e+00 : f32
    %95 = vector.broadcast %cst_30 : f32 to vector<2x32xf32>
    %96 = arith.addf %95, %94 : vector<2x32xf32>
    %97 = arith.divf %95, %96 : vector<2x32xf32>
    %98 = vector.extract_strided_slice %85 {offsets = [0, 64], sizes = [2, 32], strides = [1, 1]} : vector<2x128xf32> to vector<2x32xf32>
    %99 = math.tanh %98 : vector<2x32xf32>
    %100 = vector.extract_strided_slice %85 {offsets = [0, 96], sizes = [2, 32], strides = [1, 1]} : vector<2x128xf32> to vector<2x32xf32>
    %101 = arith.negf %100 : vector<2x32xf32>
    %102 = math.exp %101 : vector<2x32xf32>
    %cst_31 = arith.constant 1.000000e+00 : f32
    %103 = vector.broadcast %cst_31 : f32 to vector<2x32xf32>
    %104 = arith.addf %103, %102 : vector<2x32xf32>
    %105 = arith.divf %103, %104 : vector<2x32xf32>
    %106 = arith.mulf %97, %58 : vector<2x32xf32>
    %107 = arith.mulf %91, %99 : vector<2x32xf32>
    %108 = arith.addf %106, %107 : vector<2x32xf32>
    %109 = math.tanh %108 : vector<2x32xf32>
    %110 = arith.mulf %105, %109 : vector<2x32xf32>
    %111 = vector.broadcast %80 : vector<2x1xf32> to vector<2x32xf32>
    %112 = arith.mulf %111, %108 : vector<2x32xf32>
    %cst_32 = arith.constant 1.000000e+00 : f32
    %113 = vector.broadcast %cst_32 : f32 to vector<2x1xf32>
    %114 = arith.subf %113, %80 : vector<2x1xf32>
    %115 = vector.broadcast %114 : vector<2x1xf32> to vector<2x32xf32>
    %116 = arith.mulf %115, %58 : vector<2x32xf32>
    %117 = arith.addf %112, %116 : vector<2x32xf32>
    %118 = vector.broadcast %80 : vector<2x1xf32> to vector<2x32xf32>
    %119 = arith.mulf %118, %110 : vector<2x32xf32>
    %cst_33 = arith.constant 1.000000e+00 : f32
    %120 = vector.broadcast %cst_33 : f32 to vector<2x1xf32>
    %121 = arith.subf %120, %80 : vector<2x1xf32>
    %122 = vector.broadcast %121 : vector<2x1xf32> to vector<2x32xf32>
    %123 = arith.mulf %122, %65 : vector<2x32xf32>
    %124 = arith.addf %119, %123 : vector<2x32xf32>
    %125 = vector.broadcast %80 : vector<2x1xf32> to vector<2x32xf32>
    %126 = arith.mulf %125, %110 : vector<2x32xf32>
    %c0_34 = arith.constant 0 : index
    %127 = arith.index_cast %75 : i32 to index
    %c0_35 = arith.constant 0 : index
    %c0_36 = arith.constant 0 : index
    %128 = vector.load %arg5[%c0_34, %127, %c0_35, %c0_36] : memref<1x4x2x32xf32, #tpu.memory_space<vmem>>, vector<1x1x2x32xf32>
    %129 = vector.shape_cast %128 : vector<1x1x2x32xf32> to vector<2x32xf32>
    %130 = vector.shape_cast %126 : vector<2x32xf32> to vector<1x1x2x32xf32>
    tpu.vector_store %arg5[%c0_34, %127, %c0_35, %c0_36], %130 {strides = array<i32>} : memref<1x4x2x32xf32, #tpu.memory_space<vmem>>, vector<1x1x2x32xf32>,
    %c2_i32_37 = arith.constant 2 : i32
    %c2_i32_38 = arith.constant 2 : i32
    %131 = arith.muli %c2_i32_38, %c2_i32_37 : i32
    %c3_i32_39 = arith.constant 3 : i32
    %132 = arith.subi %c3_i32_39, %131 : i32
    %133 = arith.muli %arg0, %132 : i32
    %134 = arith.addi %c2_i32_37, %133 : i32
    %135 = arith.addi %7, %134 : i32
    %136 = vector.broadcast %135 : i32 to vector<2x1xi32>
    %137 = arith.cmpi slt, %136, %8 : vector<2x1xi32>
    %138 = arith.extui %137 : vector<2x1xi1> to vector<2x1xi32>
    %139 = arith.sitofp %138 : vector<2x1xi32> to vector<2x1xf32>
    %c0_40 = arith.constant 0 : index
    %140 = arith.index_cast %134 : i32 to index
    %c0_41 = arith.constant 0 : index
    %c0_42 = arith.constant 0 : index
    %141 = vector.load %arg3[%c0_40, %140, %c0_41, %c0_42] : memref<1x4x2x128xf32, #tpu.memory_space<vmem>>, vector<1x1x2x128xf32>
    %142 = vector.shape_cast %141 : vector<1x1x2x128xf32> to vector<2x128xf32>
    %cst_43 = arith.constant dense<0.000000e+00> : vector<2x128xf32>
    %143 = tpu.matmul %124, %10, %cst_43 {dimension_numbers = #tpu.dot_dimension_numbers<[1], [0], [0], [1], [0, 0, 1, 1], [], []>} : vector<2x32xf32>, vector<32x128xf32>, vector<2x128xf32> -> vector<2x128xf32>
    %144 = arith.addf %142, %143 : vector<2x128xf32>
    %145 = vector.extract_strided_slice %144 {offsets = [0, 0], sizes = [2, 32], strides = [1, 1]} : vector<2x128xf32> to vector<2x32xf32>
    %146 = arith.negf %145 : vector<2x32xf32>
    %147 = math.exp %146 : vector<2x32xf32>
    %cst_44 = arith.constant 1.000000e+00 : f32
    %148 = vector.broadcast %cst_44 : f32 to vector<2x32xf32>
    %149 = arith.addf %148, %147 : vector<2x32xf32>
    %150 = arith.divf %148, %149 : vector<2x32xf32>
    %151 = vector.extract_strided_slice %144 {offsets = [0, 32], sizes = [2, 32], strides = [1, 1]} : vector<2x128xf32> to vector<2x32xf32>
    %152 = arith.negf %151 : vector<2x32xf32>
    %153 = math.exp %152 : vector<2x32xf32>
    %cst_45 = arith.constant 1.000000e+00 : f32
    %154 = vector.broadcast %cst_45 : f32 to vector<2x32xf32>
    %155 = arith.addf %154, %153 : vector<2x32xf32>
    %156 = arith.divf %154, %155 : vector<2x32xf32>
    %157 = vector.extract_strided_slice %144 {offsets = [0, 64], sizes = [2, 32], strides = [1, 1]} : vector<2x128xf32> to vector<2x32xf32>
    %158 = math.tanh %157 : vector<2x32xf32>
    %159 = vector.extract_strided_slice %144 {offsets = [0, 96], sizes = [2, 32], strides = [1, 1]} : vector<2x128xf32> to vector<2x32xf32>
    %160 = arith.negf %159 : vector<2x32xf32>
    %161 = math.exp %160 : vector<2x32xf32>
    %cst_46 = arith.constant 1.000000e+00 : f32
    %162 = vector.broadcast %cst_46 : f32 to vector<2x32xf32>
    %163 = arith.addf %162, %161 : vector<2x32xf32>
    %164 = arith.divf %162, %163 : vector<2x32xf32>
    %165 = arith.mulf %156, %117 : vector<2x32xf32>
    %166 = arith.mulf %150, %158 : vector<2x32xf32>
    %167 = arith.addf %165, %166 : vector<2x32xf32>
    %168 = math.tanh %167 : vector<2x32xf32>
    %169 = arith.mulf %164, %168 : vector<2x32xf32>
    %170 = vector.broadcast %139 : vector<2x1xf32> to vector<2x32xf32>
    %171 = arith.mulf %170, %167 : vector<2x32xf32>
    %cst_47 = arith.constant 1.000000e+00 : f32
    %172 = vector.broadcast %cst_47 : f32 to vector<2x1xf32>
    %173 = arith.subf %172, %139 : vector<2x1xf32>
    %174 = vector.broadcast %173 : vector<2x1xf32> to vector<2x32xf32>
    %175 = arith.mulf %174, %117 : vector<2x32xf32>
    %176 = arith.addf %171, %175 : vector<2x32xf32>
    %177 = vector.broadcast %139 : vector<2x1xf32> to vector<2x32xf32>
    %178 = arith.mulf %177, %169 : vector<2x32xf32>
    %cst_48 = arith.constant 1.000000e+00 : f32
    %179 = vector.broadcast %cst_48 : f32 to vector<2x1xf32>
    %180 = arith.subf %179, %139 : vector<2x1xf32>
    %181 = vector.broadcast %180 : vector<2x1xf32> to vector<2x32xf32>
    %182 = arith.mulf %181, %124 : vector<2x32xf32>
    %183 = arith.addf %178, %182 : vector<2x32xf32>
    %184 = vector.broadcast %139 : vector<2x1xf32> to vector<2x32xf32>
    %185 = arith.mulf %184, %169 : vector<2x32xf32>
    %c0_49 = arith.constant 0 : index
    %186 = arith.index_cast %134 : i32 to index
    %c0_50 = arith.constant 0 : index
    %c0_51 = arith.constant 0 : index
    %187 = vector.load %arg5[%c0_49, %186, %c0_50, %c0_51] : memref<1x4x2x32xf32, #tpu.memory_space<vmem>>, vector<1x1x2x32xf32>
    %188 = vector.shape_cast %187 : vector<1x1x2x32xf32> to vector<2x32xf32>
    %189 = vector.shape_cast %185 : vector<2x32xf32> to vector<1x1x2x32xf32>
    tpu.vector_store %arg5[%c0_49, %186, %c0_50, %c0_51], %189 {strides = array<i32>} : memref<1x4x2x32xf32, #tpu.memory_space<vmem>>, vector<1x1x2x32xf32>,
    %c3_i32_52 = arith.constant 3 : i32
    %c2_i32_53 = arith.constant 2 : i32
    %190 = arith.muli %c2_i32_53, %c3_i32_52 : i32
    %c3_i32_54 = arith.constant 3 : i32
    %191 = arith.subi %c3_i32_54, %190 : i32
    %192 = arith.muli %arg0, %191 : i32
    %193 = arith.addi %c3_i32_52, %192 : i32
    %194 = arith.addi %7, %193 : i32
    %195 = vector.broadcast %194 : i32 to vector<2x1xi32>
    %196 = arith.cmpi slt, %195, %8 : vector<2x1xi32>
    %197 = arith.extui %196 : vector<2x1xi1> to vector<2x1xi32>
    %198 = arith.sitofp %197 : vector<2x1xi32> to vector<2x1xf32>
    %c0_55 = arith.constant 0 : index
    %199 = arith.index_cast %193 : i32 to index
    %c0_56 = arith.constant 0 : index
    %c0_57 = arith.constant 0 : index
    %200 = vector.load %arg3[%c0_55, %199, %c0_56, %c0_57] : memref<1x4x2x128xf32, #tpu.memory_space<vmem>>, vector<1x1x2x128xf32>
    %201 = vector.shape_cast %200 : vector<1x1x2x128xf32> to vector<2x128xf32>
    %cst_58 = arith.constant dense<0.000000e+00> : vector<2x128xf32>
    %202 = tpu.matmul %183, %10, %cst_58 {dimension_numbers = #tpu.dot_dimension_numbers<[1], [0], [0], [1], [0, 0, 1, 1], [], []>} : vector<2x32xf32>, vector<32x128xf32>, vector<2x128xf32> -> vector<2x128xf32>
    %203 = arith.addf %201, %202 : vector<2x128xf32>
    %204 = vector.extract_strided_slice %203 {offsets = [0, 0], sizes = [2, 32], strides = [1, 1]} : vector<2x128xf32> to vector<2x32xf32>
    %205 = arith.negf %204 : vector<2x32xf32>
    %206 = math.exp %205 : vector<2x32xf32>
    %cst_59 = arith.constant 1.000000e+00 : f32
    %207 = vector.broadcast %cst_59 : f32 to vector<2x32xf32>
    %208 = arith.addf %207, %206 : vector<2x32xf32>
    %209 = arith.divf %207, %208 : vector<2x32xf32>
    %210 = vector.extract_strided_slice %203 {offsets = [0, 32], sizes = [2, 32], strides = [1, 1]} : vector<2x128xf32> to vector<2x32xf32>
    %211 = arith.negf %210 : vector<2x32xf32>
    %212 = math.exp %211 : vector<2x32xf32>
    %cst_60 = arith.constant 1.000000e+00 : f32
    %213 = vector.broadcast %cst_60 : f32 to vector<2x32xf32>
    %214 = arith.addf %213, %212 : vector<2x32xf32>
    %215 = arith.divf %213, %214 : vector<2x32xf32>
    %216 = vector.extract_strided_slice %203 {offsets = [0, 64], sizes = [2, 32], strides = [1, 1]} : vector<2x128xf32> to vector<2x32xf32>
    %217 = math.tanh %216 : vector<2x32xf32>
    %218 = vector.extract_strided_slice %203 {offsets = [0, 96], sizes = [2, 32], strides = [1, 1]} : vector<2x128xf32> to vector<2x32xf32>
    %219 = arith.negf %218 : vector<2x32xf32>
    %220 = math.exp %219 : vector<2x32xf32>
    %cst_61 = arith.constant 1.000000e+00 : f32
    %221 = vector.broadcast %cst_61 : f32 to vector<2x32xf32>
    %222 = arith.addf %221, %220 : vector<2x32xf32>
    %223 = arith.divf %221, %222 : vector<2x32xf32>
    %224 = arith.mulf %215, %176 : vector<2x32xf32>
    %225 = arith.mulf %209, %217 : vector<2x32xf32>
    %226 = arith.addf %224, %225 : vector<2x32xf32>
    %227 = math.tanh %226 : vector<2x32xf32>
    %228 = arith.mulf %223, %227 : vector<2x32xf32>
    %229 = vector.broadcast %198 : vector<2x1xf32> to vector<2x32xf32>
    %230 = arith.mulf %229, %226 : vector<2x32xf32>
    %cst_62 = arith.constant 1.000000e+00 : f32
    %231 = vector.broadcast %cst_62 : f32 to vector<2x1xf32>
    %232 = arith.subf %231, %198 : vector<2x1xf32>
    %233 = vector.broadcast %232 : vector<2x1xf32> to vector<2x32xf32>
    %234 = arith.mulf %233, %176 : vector<2x32xf32>
    %235 = arith.addf %230, %234 : vector<2x32xf32>
    %236 = vector.broadcast %198 : vector<2x1xf32> to vector<2x32xf32>
    %237 = arith.mulf %236, %228 : vector<2x32xf32>
    %cst_63 = arith.constant 1.000000e+00 : f32
    %238 = vector.broadcast %cst_63 : f32 to vector<2x1xf32>
    %239 = arith.subf %238, %198 : vector<2x1xf32>
    %240 = vector.broadcast %239 : vector<2x1xf32> to vector<2x32xf32>
    %241 = arith.mulf %240, %183 : vector<2x32xf32>
    %242 = arith.addf %237, %241 : vector<2x32xf32>
    %243 = vector.broadcast %198 : vector<2x1xf32> to vector<2x32xf32>
    %244 = arith.mulf %243, %228 : vector<2x32xf32>
    %c0_64 = arith.constant 0 : index
    %245 = arith.index_cast %193 : i32 to index
    %c0_65 = arith.constant 0 : index
    %c0_66 = arith.constant 0 : index
    %246 = vector.load %arg5[%c0_64, %245, %c0_65, %c0_66] : memref<1x4x2x32xf32, #tpu.memory_space<vmem>>, vector<1x1x2x32xf32>
    %247 = vector.shape_cast %246 : vector<1x1x2x32xf32> to vector<2x32xf32>
    %248 = vector.shape_cast %244 : vector<2x32xf32> to vector<1x1x2x32xf32>
    tpu.vector_store %arg5[%c0_64, %245, %c0_65, %c0_66], %248 {strides = array<i32>} : memref<1x4x2x32xf32, #tpu.memory_space<vmem>>, vector<1x1x2x32xf32>,
    %c4_i32_67 = arith.constant 4 : i32
    %c0_68 = arith.constant 0 : index
    %c0_69 = arith.constant 0 : index
    %249 = vector.load %arg6[%c0_68, %c0_69] : memref<2x32xf32, #tpu.memory_space<vmem>>, vector<2x32xf32>
    tpu.vector_store %arg6[%c0_68, %c0_69], %242 {strides = array<i32>} : memref<2x32xf32, #tpu.memory_space<vmem>>, vector<2x32xf32>,
    %c0_70 = arith.constant 0 : index
    %c0_71 = arith.constant 0 : index
    %250 = vector.load %arg7[%c0_70, %c0_71] : memref<2x32xf32, #tpu.memory_space<vmem>>, vector<2x32xf32>
    tpu.vector_store %arg7[%c0_70, %c0_71], %235 {strides = array<i32>} : memref<2x32xf32, #tpu.memory_space<vmem>>, vector<2x32xf32>,
    return
  }
  func.func @transform_0(%arg0: i32, %arg1: i32) -> (i32, i32) {
    %c0_i32 = arith.constant 0 : i32
    %c0_i32_0 = arith.constant 0 : i32
    %c0_i32_1 = arith.constant 0 : i32
    return %c0_i32, %c0_i32_0 : i32, i32
  }
  func.func @transform_1(%arg0: i32, %arg1: i32) -> (i32, i32, i32, i32) {
    %c2_i32 = arith.constant 2 : i32
    %0 = arith.muli %c2_i32, %arg1 : i32
    %c1_i32 = arith.constant 1 : i32
    %1 = arith.subi %c1_i32, %0 : i32
    %2 = arith.muli %arg0, %1 : i32
    %3 = arith.addi %arg1, %2 : i32
    %c0_i32 = arith.constant 0 : i32
    %c0_i32_0 = arith.constant 0 : i32
    %c0_i32_1 = arith.constant 0 : i32
    return %arg0, %3, %c0_i32, %c0_i32_0 : i32, i32, i32, i32
  }
  func.func @transform_2(%arg0: i32, %arg1: i32) -> (i32, i32, i32) {
    %c0_i32 = arith.constant 0 : i32
    %c0_i32_0 = arith.constant 0 : i32
    %c0_i32_1 = arith.constant 0 : i32
    return %arg0, %c0_i32, %c0_i32_0 : i32, i32, i32
  }
  func.func @transform_3(%arg0: i32, %arg1: i32) -> (i32, i32, i32, i32) {
    %c2_i32 = arith.constant 2 : i32
    %0 = arith.muli %c2_i32, %arg1 : i32
    %c1_i32 = arith.constant 1 : i32
    %1 = arith.subi %c1_i32, %0 : i32
    %2 = arith.muli %arg0, %1 : i32
    %3 = arith.addi %arg1, %2 : i32
    %c0_i32 = arith.constant 0 : i32
    %c0_i32_0 = arith.constant 0 : i32
    %c0_i32_1 = arith.constant 0 : i32
    return %arg0, %3, %c0_i32, %c0_i32_0 : i32, i32, i32, i32
  }
}

</mosaic_0001>

<bundles_post_ra>
// kernel: rnn_forward.2
= control target key start
LH: loop header
LB: loop body
LE: loop exit
PB: predicated region body
PF: predicated region fallthrough
CT: control target
= control target key end

     0   :  { %s1030_s12 = smov 0   ;;  %s1032_s13 = smov 0   ;;  %s1200_s0 = inlined_call_operand.vmem [shape: s32[2,1], index: 0, kind: input, shape index: {}]   ;;  %s1201_s1 = inlined_call_operand.vmem [shape: f32[2,8,2,128], index: 1, kind: input, shape index: {}]   ;;  %s1202_s2 = inlined_call_operand.vmem [shape: f32[2,32,128], index: 2, kind: input, shape index: {}]   ;;  %s1203_s3 = inlined_call_operand.vmem [shape: f32[2,8,2,32], index: 3, kind: output, shape index: {}]  }
   0x1   :  { %s1034_s14 = smov 0   ;;  %s1036_s15 = smov 0  }
   0x2   :  { %s1038_s16 = smov 0  }
   0x3 LB: > { %s22_s17 = sadd.s32 1, %s994_s14  ;;  %s25_s18 = sadd.s32 1, %s998_s15  ;;  %s1002_s16 = sphi %s1038_s16, %s13_s16   ;;  %s998_s15 = sphi %s1036_s15, %s1207_s15   ;;  %s994_s14 = sphi %s1034_s14, %s1206_s14   ;;  %s990_s13 = sphi %s1032_s13, %s1205_s13   ;;  %s986_s12 = sphi %s1030_s12, %s1204_s12  }
   0x4   : > { %p23_p0 = scmp.ge.s32.totalorder %s22_s17, 2  ;;  %p844_p1 = scmp.ge.s32.totalorder %s1002_s16, 1 }
   0x5   : > { %p192_p2 = scmp.lt.s32.totalorder %s1002_s16, 5 }
   0x6   : > { %s1209_s17 = smov (%p23_p0, %s22_s17), 0  ;;  %s1211_s18 = smov (!%p23_p0, %s25_s18), %s998_s15 }
   0x7   : > { %p193_p3 = pnand %p844_p1, %p192_p2  ;;  %p27_p4 = scmp.ge.s32.totalorder %s1211_s18, 2 }
   0x8   : > { %s845_s19 = sshll.u32 (!%p193_p3), %s986_s12, 1  ;;  %p242_p5 = scmp.lt.s32.totalorder (!%p193_p3), %s990_s13, 1 }
   0x9   : > { %s1213_s18 = smov (%p27_p4, %s1211_s18), 0  ;;  %196 = sbr.rel (%p193_p3) target bundleno = 2373 (0x945), region = 32 }
   0xa   : > { %s238_s20 = ssub.s32 (!%p193_p3), 1, %s845_s19  ;;  %p855_p7 = scmp.ne.s32.totalorder (!%p193_p3), %s986_s12, 0 }
   0xb   : > { %s239_s21 = smul.u32 (!%p193_p3), %s990_s13, %s238_s20 }
   0xd   : > { %s240_s23 = sadd.s32 (!%p193_p3), %s986_s12, %s239_s21 }
   0xe   : > { %s243_s22 = scalar_select %p242_p5, %s990_s13, 1 }
   0xf   : > { %s1069_s24 = sshll.u32 %s240_s23, 2 }
  0x10   : > { %p244_p6 = scmp.lt.s32.totalorder %s1069_s24, 7  ;;  %s882_s25 = sshll.u32 %s243_s22, 5 }
  0x11   : > { %s847_s26 = sshll.u32 %s243_s22, 3  ;;  %s259_s29 = scalar_lea.vmem %s1202_s2, %s882_s25 }
  0x12   : > { %s245_s30 = scalar_select %p244_p6, %s1069_s24, 7 }
  0x13   : > { %281 = sbr.rel (%p855_p7) target bundleno = 27 (0x1b), region = 36 }
  0x14   : > { %s247_s4 = sadd.s32 %s847_s26, %s245_s30 }
  0x15   : > { %s848_s5 = sshll.u32 %s247_s4, 1 }
  0x16   : > { %s1079_s8 = scalar_lea.vmem %s1201_s1, %s848_s5  ;;  %s1084_s11 = scalar_lea.vmem %s1203_s3, %s848_s5 }
  0x18   : > { %vm282_vm0 = vcmask 254976   ;;  %v1004_v0 = vmov 0.0  }
  0x19   : > { %283 = vst.msk [vmem:[#allocation2] sm:$0x3] %vm282_vm0, %v1004_v0 }
  0x1a   : > { %284 = vst.msk [vmem:[#allocation3] sm:$0x3] %vm282_vm0, %v1004_v0 }
  0x1b PF: > { %v294_v1 = vld [vmem:[%s259_s29 + $0x18] sm:$0xff]  ;;  %v293_v2 = vld [vmem:[%s259_s29 + $0x10] sm:$0xff]  ;;  %v292_v3 = vld [vmem:[%s259_s29 + $0x8] sm:$0xff]  ;;  %vm306_vm1 = vcmask 261120   ;;  %s859_s12 = smul.u32 6, %s990_s13  ;;  %s1005_s20 = smov 64  }
  0x1c   : > { %322 = vmatpush.msra.mxu0 %v294_v1  ;;  %430 = vmatpush.msra.mxu1 %v294_v1  ;;  %v291_v4 = vld [vmem:[%s259_s29] sm:$0xff]  ;;  %s1006_s21 = smov 32   ;;  %v1007_v15 = vmov 0   ;;  %s297_s22 = smul.u32 3, %s990_s13  ;;  %v1008_v29 = vmov 0.0  }
  0x1d   : > { %525 = vmatpush.msra.mxu2 %v294_v1  ;;  %621 = vmatpush.msra.mxu3 %v294_v1  ;;  %s304_s19 = scalar_lea.vmem %s1079_s8, %s859_s12  ;;  %v1102_v24 = vld [vmem:[%s1200_s0] sm:$0x3]  ;;  %s1009_s27 = smov 96  }
  0x1e   : > { %323 = vmatpush.msra.mxu0 %v293_v2  ;;  %431 = vmatpush.msra.mxu1 %v293_v2  ;;  %v305_v6 = vld [vmem:[%s304_s19] sm:$0x3]  ;;  %s298_s23 = sadd.s32 %s1069_s24, %s297_s22  ;;  %s863_s28 = sshll.u32 %s990_s13, 1 }
  0x1f   : > { %526 = vmatpush.msra.mxu2 %v293_v2  ;;  %622 = vmatpush.msra.mxu3 %v293_v2  ;;  %v299_v25 = vstv %s298_s23  ;;  %s773_s29 = scalar_lea.vmem %s1079_s8, %s863_s28  ;;  %s404_s30 = sadd.s32 1, %s990_s13 }
  0x20   : > { %324 = vmatpush.msra.mxu0 %v292_v3  ;;  %v1087_v5 = vld [vmem:[#allocation2] sm:$0x3]  ;;  %432 = vmatpush.msra.mxu1 %v292_v3  ;;  %vm300_vm6 = vcmp.lt.s32.totalorder %v299_v25, %v1102_v24  ;;  %v864_v47 = vld [vmem:[%s773_s29 + $0x2] sm:$0x3]  ;;  %s405_s4 = sadd.s32 %s1069_s24, %s404_s30  ;;  %s499_s5 = ssub.s32 2, %s990_s13 }
  0x21   : > { %527 = vmatpush.msra.mxu2 %v292_v3  ;;  %623 = vmatpush.msra.mxu3 %v292_v3  ;;  %v296_v10 = vld [vmem:[#allocation3] sm:$0x3]  ;;  %v858_v30 = vsel %vm300_vm6, 1.0, %v1008_v29  ;;  %v406_v54 = vstv %s405_s4  ;;  %s1133_s6 = sshll.u32 %s499_s5, 1  ;;  %s500_s9 = sadd.s32 %s1069_s24, %s499_s5  ;;  %vm402_vm6 = vcmask 254976  }
  0x22   : > { %325 = vmatpush.msra.mxu0 %v291_v4  ;;  %433 = vmatpush.msra.mxu1 %v291_v4  ;;  %v378_v31 = vsub.f32 1.0, %v858_v30  ;;  %vm407_vm7 = vcmp.lt.s32.totalorder %v406_v54, %v1102_v24  ;;  %s506_s7 = scalar_lea.vmem %s1079_s8, %s1133_s6  ;;  %v501_v25 = vstv %s500_s9  ;;  %s874_s10 = smul.u32 4294967290, %s990_s13 }
  0x23   : > { %860 = vmatmul.msk.f32.vlgmr.msra.gmra.mxu0 %vm306_vm1, %v1087_v5  ;;  %528 = vmatpush.msra.mxu2 %v291_v4  ;;  %v862_v55 = vsel %vm407_vm7, 1.0, %v1008_v29  ;;  %vm502_vm12 = vcmp.lt.s32.totalorder %v501_v25, %v1102_v24  ;;  %s594_s22 = smul.u32 4294967293, %s990_s13 }
  0x24   : > { %624 = vmatpush.msra.mxu3 %v291_v4  ;;  %929 = vset.pattern.permute.xlu1 %v1007_v15  ;;  %v482_v4 = vsub.f32 1.0, %v862_v55  ;;  %s784_s19 = scalar_lea.vmem %s1079_s8, %s874_s10  ;;  %s776_s8 = scalar_lea.vmem %s1084_s11, %s863_s28 }
  0x25   : > { %930 = vset.pattern.permute.xlu2 %v1007_v15  ;;  %931 = vset.pattern.permute.xlu0 %v1007_v15  ;;  %s595_s23 = sadd.s32 3, %s594_s22  ;;  %s788_s26 = scalar_lea.vmem %s1084_s11, %s874_s10 }
  0x26   : > { %s596_s25 = sadd.s32 %s1069_s24, %s595_s23  ;;  %s401_s24 = scalar_lea.vmem %s1084_s11, %s859_s12 }
  0xa0   : > { %v327_v7 = vpop.f32.mrf.mxu0 }
  0xa1   : > { %v330_v8 = vadd.f32 %v327_v7, %v305_v6 }
  0xa3   : > { %932 = vtanh.f32 %v330_v8  ;;  %v861_v11 = vmul.f32 -1.442695, %v330_v8 }
  0xa5   : > { %934 = vpow2.f32 %v861_v11 }
  0xa9   : > { %v933_v9 = vpop.eup %932 }
  0xaa   : > { %357 = vrot.lane.b32.xlu0 %v933_v9, %s1005_s20 }
  0xab   : > { %v935_v12 = vpop.eup %934 }
  0xac   : > { %v334_v13 = vadd.f32 1.0, %v935_v12 }
  0xae   : > { %936 = vrcp.f32 %v334_v13  ;;  %v346_v20 = vand.u32 2147483648, %v334_v13  ;;  %vm340_vm3 = vweird.f32 %v334_v13  ;;  %v344_v21 = vand.u32 2147483647, %v334_v13 }
  0xb0   : > { %v347_v23 = vor.u32 1.1754944e-38, %v346_v20  ;;  %vm345_vm5 = vcmp.eq.f32.partialorder %v344_v21, 8.507059e+37  ;;  %v507_v20 = vld [vmem:[%s506_s7] sm:$0x3] }
  0xb2   : > { %352 = vrot.lane.b32.xlu0 %v296_v10, %s1006_s21 }
  0xb4   : > { %v937_v14 = vpop.eup %936 }
  0xb5   : > { %v336_v16 = vmul.f32 %v937_v14, %v334_v13  ;;  %vm341_vm2 = vweird.f32 %v937_v14 }
  0xb6   : > { %vm342_vm4 = vmor %vm340_vm3, %vm341_vm2 }
  0xb7   : > { %v337_v17 = vsub.f32 1.0, %v336_v16 }
  0xb9   : > { %v338_v18 = vmul.f32 %v937_v14, %v337_v17 }
  0xbb   : > { %v339_v19 = vadd.f32 %v937_v14, %v338_v18 }
  0xbd   : > { %v343_v22 = vsel %vm342_vm4, %v937_v14, %v339_v19 }
  0xbe   : > { %v348_v27 = vsel %vm345_vm5, %v347_v23, %v343_v22 }
 0x11c   : > { %v358_v26 = vpop.permute.xlu0 %357 }
 0x11d   : > { %v360_v28 = vmul.f32 %v358_v26, %v348_v27  ;;  %v869_v26 = vsel %vm502_vm12, 1.0, %v1008_v29 }
 0x11f   : > { %362 = vrot.lane.b32.xlu1 %v360_v28, %s1006_s21 }
 0x124   : > { %v353_v32 = vpop.permute.xlu0 %352 }
 0x125   : > { %v355_v33 = vmul.f32 %v353_v32, %v348_v27 }
 0x127   : > { %381 = vperm.xlu1 %929, %v378_v31  }
 0x191   : > { %v363_v34 = vpop.permute.xlu1 %362 }
 0x192   : > { %v365_v35 = vadd.f32 %v363_v34, %v355_v33 }
 0x194   : > { %938 = vtanh.f32 %v365_v35 }
 0x199   : > { %v382_v36 = vpop.permute.xlu1 %381 }
 0x19a   : > { %v939_v37 = vpop.eup %938  ;;  %v391_v38 = vmul.f32 %v382_v36, %v1087_v5  ;;  %v384_v39 = vmul.f32 %v382_v36, %v296_v10 }
 0x19b   : > { %368 = vrot.lane.b32.xlu2 %v939_v37, %s1005_s20 }
 0x19c   : > { %393 = vrot.lane.b32.xlu0 %v391_v38, %s1009_s27 }
 0x1a3   : > { %374 = vperm.xlu2 %930, %v858_v30  }
 0x1a4   : > { %386 = vrot.lane.b32.xlu0 %v384_v39, %s1006_s21 }
 0x1ac   : > { %478 = vperm.xlu0 %931, %v862_v55  }
 0x1f5   : > { %v369_v40 = vpop.permute.xlu2 %368 }
 0x1f6   : > { %v371_v42 = vmul.f32 %v369_v40, %v348_v27 }
 0x1fd   : > { %v375_v41 = vpop.permute.xlu2 %374 }
 0x1fe   : > { %v1111_v43 = vmul.f32 %v375_v41, %v371_v42  ;;  %v377_v6 = vmul.f32 %v375_v41, %v365_v35 }
 0x20e   : > { %v394_v44 = vpop.permute.xlu0 %393 }
 0x20f   : > { %v396_v45 = vadd.f32 %v394_v44, %v1111_v43  ;;  %v577_v44 = vsub.f32 1.0, %v869_v26 }
 0x211   : > { %414 = vrot.lane.b32.xlu1 %v396_v45, %s1006_s21 }
 0x216   : > { %v387_v5 = vpop.permute.xlu0 %386 }
 0x217   : > { %v389_v7 = vadd.f32 %v387_v5, %v377_v6 }
 0x21e   : > { %v479_v15 = vpop.permute.xlu0 %478 }
 0x283   : > { %v415_v46 = vpop.permute.xlu1 %414 }
 0x284   : > { %865 = vmatmul.msk.f32.vlgmr.msra.gmra.mxu1 %vm306_vm1, %v415_v46 }
 0x301   : > { %v435_v48 = vpop.f32.mrf.mxu1 }
 0x302   : > { %v438_v49 = vadd.f32 %v864_v47, %v435_v48 }
 0x304   : > { %940 = vtanh.f32 %v438_v49  ;;  %v866_v51 = vmul.f32 -1.442695, %v438_v49 }
 0x306   : > { %942 = vpow2.f32 %v866_v51 }
 0x30a   : > { %v941_v50 = vpop.eup %940 }
 0x30b   : > { %461 = vrot.lane.b32.xlu2 %v941_v50, %s1005_s20 }
 0x30c   : > { %v943_v52 = vpop.eup %942 }
 0x30d   : > { %v442_v53 = vadd.f32 1.0, %v943_v52 }
 0x30f   : > { %944 = vrcp.f32 %v442_v53  ;;  %v454_v61 = vand.u32 2147483648, %v442_v53  ;;  %vm448_vm9 = vweird.f32 %v442_v53  ;;  %v452_v62 = vand.u32 2147483647, %v442_v53 }
 0x311   : > { %v455_v0 = vor.u32 1.1754944e-38, %v454_v61  ;;  %vm453_vm11 = vcmp.eq.f32.partialorder %v452_v62, 8.507059e+37 }
 0x315   : > { %v945_v56 = vpop.eup %944 }
 0x316   : > { %v444_v57 = vmul.f32 %v945_v56, %v442_v53  ;;  %vm449_vm8 = vweird.f32 %v945_v56 }
 0x317   : > { %vm450_vm10 = vmor %vm448_vm9, %vm449_vm8 }
 0x318   : > { %v445_v58 = vsub.f32 1.0, %v444_v57 }
 0x31a   : > { %v446_v59 = vmul.f32 %v945_v56, %v445_v58 }
 0x31c   : > { %v447_v60 = vadd.f32 %v945_v56, %v446_v59 }
 0x31e   : > { %v451_v63 = vsel %vm450_vm10, %v945_v56, %v447_v60  ;;  %v875_v60 = vld [vmem:[%s784_s19 + $0x6] sm:$0x3] }
 0x31f   : > { %v456_v2 = vsel %vm453_vm11, %v455_v0, %v451_v63  ;;  %v597_v0 = vstv %s596_s25 }
 0x320   : > { %v459_v8 = vmul.f32 %v456_v2, %v389_v7  ;;  %vm598_vm2 = vcmp.lt.s32.totalorder %v597_v0, %v1102_v24 }
 0x365   : > { %v462_v1 = vpop.permute.xlu2 %461 }
 0x366   : > { %v464_v3 = vmul.f32 %v462_v1, %v456_v2  ;;  %v873_v1 = vsel %vm598_vm2, 1.0, %v1008_v29 }
 0x368   : > { %466 = vrot.lane.b32.xlu1 %v464_v3, %s1006_s21 }
 0x370   : > { %485 = vperm.xlu1 %929, %v482_v4  }
 0x3da   : > { %v467_v9 = vpop.permute.xlu1 %466 }
 0x3db   : > { %v469_v10 = vadd.f32 %v467_v9, %v459_v8 }
 0x3dd   : > { %946 = vtanh.f32 %v469_v10  ;;  %v481_v46 = vmul.f32 %v479_v15, %v469_v10 }
 0x3e2   : > { %v486_v12 = vpop.permute.xlu1 %485 }
 0x3e3   : > { %v947_v11 = vpop.eup %946  ;;  %v491_v16 = vmul.f32 %v486_v12, %v396_v45  ;;  %v488_v45 = vmul.f32 %v486_v12, %v389_v7 }
 0x3e4   : > { %472 = vrot.lane.b32.xlu2 %v947_v11, %s1005_s20 }
 0x3e5   : > { %v489_v47 = vadd.f32 %v488_v45, %v481_v46 }
 0x43e   : > { %v473_v13 = vpop.permute.xlu2 %472 }
 0x43f   : > { %v475_v14 = vmul.f32 %v473_v13, %v456_v2 }
 0x441   : > { %v1127_v17 = vmul.f32 %v479_v15, %v475_v14  ;;  %v673_v15 = vsub.f32 1.0, %v873_v1 }
 0x443   : > { %v492_v18 = vadd.f32 %v491_v16, %v1127_v17 }
 0x445   : > { %509 = vrot.lane.b32.xlu2 %v492_v18, %s1006_s21 }
 0x49f   : > { %v510_v19 = vpop.permute.xlu2 %509 }
 0x4a0   : > { %871 = vmatmul.msk.f32.vlgmr.msra.gmra.mxu2 %vm306_vm1, %v510_v19 }
 0x523   : > { %v530_v21 = vpop.f32.mrf.mxu2 }
 0x524   : > { %v533_v22 = vadd.f32 %v530_v21, %v507_v20 }
 0x526   : > { %948 = vtanh.f32 %v533_v22  ;;  %v872_v27 = vmul.f32 -1.442695, %v533_v22 }
 0x528   : > { %950 = vpow2.f32 %v872_v27 }
 0x52c   : > { %v949_v23 = vpop.eup %948 }
 0x52d   : > { %556 = vrot.lane.b32.xlu1 %v949_v23, %s1005_s20 }
 0x52e   : > { %v951_v28 = vpop.eup %950 }
 0x52f   : > { %v537_v30 = vadd.f32 1.0, %v951_v28 }
 0x531   : > { %952 = vrcp.f32 %v537_v30  ;;  %v549_v36 = vand.u32 2147483648, %v537_v30  ;;  %vm543_vm14 = vweird.f32 %v537_v30  ;;  %v547_v37 = vand.u32 2147483647, %v537_v30 }
 0x533   : > { %v550_v39 = vor.u32 1.1754944e-38, %v549_v36  ;;  %vm548_vm0 = vcmp.eq.f32.partialorder %v547_v37, 8.507059e+37 }
 0x535   : > { %573 = vperm.xlu1 %929, %v869_v26  }
 0x537   : > { %v953_v31 = vpop.eup %952 }
 0x538   : > { %v539_v32 = vmul.f32 %v953_v31, %v537_v30  ;;  %vm544_vm13 = vweird.f32 %v953_v31 }
 0x539   : > { %vm545_vm15 = vmor %vm543_vm14, %vm544_vm13 }
 0x53a   : > { %v540_v33 = vsub.f32 1.0, %v539_v32 }
 0x53c   : > { %v541_v34 = vmul.f32 %v953_v31, %v540_v33 }
 0x53e   : > { %v542_v35 = vadd.f32 %v953_v31, %v541_v34 }
 0x540   : > { %v546_v38 = vsel %vm545_vm15, %v953_v31, %v542_v35 }
 0x541   : > { %v551_v41 = vsel %vm548_vm0, %v550_v39, %v546_v38 }
 0x542   : > { %v554_v48 = vmul.f32 %v551_v41, %v489_v47 }
 0x59f   : > { %v557_v40 = vpop.permute.xlu1 %556 }
 0x5a0   : > { %v559_v42 = vmul.f32 %v557_v40, %v551_v41 }
 0x5a2   : > { %561 = vrot.lane.b32.xlu2 %v559_v42, %s1006_s21 }
 0x5a7   : > { %v574_v55 = vpop.permute.xlu1 %573 }
 0x5aa   : > { %580 = vperm.xlu2 %930, %v577_v44  }
 0x5fc   : > { %v562_v49 = vpop.permute.xlu2 %561 }
 0x5fd   : > { %v564_v50 = vadd.f32 %v562_v49, %v554_v48 }
 0x5ff   : > { %954 = vtanh.f32 %v564_v50 }
 0x604   : > { %v581_v52 = vpop.permute.xlu2 %580 }
 0x605   : > { %v955_v51 = vpop.eup %954  ;;  %v586_v56 = vmul.f32 %v581_v52, %v492_v18  ;;  %v583_v16 = vmul.f32 %v581_v52, %v489_v47 }
 0x606   : > { %567 = vrot.lane.b32.xlu0 %v955_v51, %s1005_s20 }
 0x678   : > { %v568_v53 = vpop.permute.xlu0 %567 }
 0x679   : > { %v570_v54 = vmul.f32 %v568_v53, %v551_v41 }
 0x67b   : > { %v585_v57 = vmul.f32 %v574_v55, %v570_v54 }
 0x67d   : > { %v1143_v58 = vadd.f32 %v586_v56, %v585_v57 }
 0x67f   : > { %605 = vrot.lane.b32.xlu0 %v1143_v58, %s1006_s21 }
 0x6f1   : > { %v606_v59 = vpop.permute.xlu0 %605 }
 0x6f2   : > { %876 = vmatmul.msk.f32.vlgmr.msra.gmra.mxu3 %vm306_vm1, %v606_v59 }
 0x775   : > { %v626_v61 = vpop.f32.mrf.mxu3 }
 0x776   : > { %v629_v62 = vadd.f32 %v875_v60, %v626_v61 }
 0x778   : > { %956 = vtanh.f32 %v629_v62  ;;  %v877_v2 = vmul.f32 -1.442695, %v629_v62 }
 0x77a   : > { %958 = vpow2.f32 %v877_v2 }
 0x77e   : > { %v957_v63 = vpop.eup %956 }
 0x77f   : > { %652 = vrot.lane.b32.xlu1 %v957_v63, %s1005_s20 }
 0x780   : > { %v959_v3 = vpop.eup %958 }
 0x781   : > { %v633_v4 = vadd.f32 1.0, %v959_v3 }
 0x783   : > { %960 = vrcp.f32 %v633_v4  ;;  %v645_v10 = vand.u32 2147483648, %v633_v4  ;;  %vm639_vm3 = vweird.f32 %v633_v4  ;;  %v643_v24 = vand.u32 2147483647, %v633_v4 }
 0x785   : > { %v646_v11 = vor.u32 1.1754944e-38, %v645_v10  ;;  %vm644_vm5 = vcmp.eq.f32.partialorder %v643_v24, 8.507059e+37 }
 0x787   : > { %669 = vperm.xlu1 %929, %v873_v1  }
 0x789   : > { %v961_v5 = vpop.eup %960 }
 0x78a   : > { %v635_v6 = vmul.f32 %v961_v5, %v633_v4  ;;  %vm640_vm1 = vweird.f32 %v961_v5 }
 0x78b   : > { %vm641_vm4 = vmor %vm639_vm3, %vm640_vm1 }
 0x78c   : > { %v636_v7 = vsub.f32 1.0, %v635_v6 }
 0x78e   : > { %v637_v8 = vmul.f32 %v961_v5, %v636_v7 }
 0x78f   : > { %494 = vrot.lane.b32.xlu1 %v1127_v17, %s1006_s21  ;;  %v576_v17 = vmul.f32 %v574_v55, %v564_v50 }
 0x790   : > { %v638_v9 = vadd.f32 %v961_v5, %v637_v8 }
 0x791   : > { %v584_v18 = vadd.f32 %v583_v16, %v576_v17 }
 0x792   : > { %v642_v29 = vsel %vm641_vm4, %v961_v5, %v638_v9 }
 0x793   : > { %v647_v13 = vsel %vm644_vm5, %v646_v11, %v642_v29 }
 0x794   : > { %v650_v19 = vmul.f32 %v647_v13, %v584_v18 }
 0x7f1   : > { %v653_v12 = vpop.permute.xlu1 %652 }
 0x7f2   : > { %v655_v14 = vmul.f32 %v653_v12, %v647_v13 }
 0x7f4   : > { %657 = vrot.lane.b32.xlu2 %v655_v14, %s1006_s21 }
 0x7f9   : > { %v670_v22 = vpop.permute.xlu1 %669 }
 0x7fc   : > { %676 = vperm.xlu2 %930, %v673_v15  }
 0x801   : > { %v495_v37 = vpop.permute.xlu1 %494 }
 0x804   : > { %589 = vrot.lane.b32.xlu2 %v585_v57, %s1006_s21 }
 0x84e   : > { %v658_v20 = vpop.permute.xlu2 %657 }
 0x84f   : > { %v660_v21 = vadd.f32 %v658_v20, %v650_v19 }
 0x851   : > { %962 = vtanh.f32 %v660_v21  ;;  %v672_v26 = vmul.f32 %v670_v22, %v660_v21 }
 0x856   : > { %v677_v23 = vpop.permute.xlu2 %676 }
 0x857   : > { %v963_v25 = vpop.eup %962  ;;  %v679_v27 = vmul.f32 %v677_v23, %v584_v18  ;;  %v682_v34 = vmul.f32 %v677_v23, %v1143_v58 }
 0x858   : > { %663 = vrot.lane.b32.xlu0 %v963_v25, %s1005_s20  ;;  %s592_s20 = scalar_lea.vmem %s1084_s11, %s1133_s6 }
 0x859   : > { %v680_v28 = vadd.f32 %v679_v27, %v672_v26 }
 0x85b   : > { %696 = vrot.lane.b32.xlu2 %v680_v28, %s1009_s27 }
 0x85e   : > { %v590_v30 = vpop.permute.xlu2 %589 }
 0x860   : > { %398 = vrot.lane.b32.xlu0 %v1111_v43, %s1006_s21 }
 0x8b5   : > { %v697_v31 = vpop.permute.xlu2 %696 }
 0x8b6   : > { %699 = vst.msk [vmem:[#allocation3] sm:$0x3] %vm402_vm6, %v697_v31 }
 0x8ca   : > { %v664_v32 = vpop.permute.xlu0 %663 }
 0x8cb   : > { %v666_v33 = vmul.f32 %v664_v32, %v647_v13 }
 0x8cd   : > { %v681_v35 = vmul.f32 %v670_v22, %v666_v33 }
 0x8cf   : > { %685 = vrot.lane.b32.xlu0 %v681_v35, %s1006_s21  ;;  %v683_v36 = vadd.f32 %v682_v34, %v681_v35 }
 0x8d1   : > { %691 = vrot.lane.b32.xlu1 %v683_v36, %s1006_s21 }
 0x8d2   : > { %v399_v43 = vpop.permute.xlu0 %398 }
 0x8d3   : > { %403 = vst.msk [vmem:[%s401_s24] sm:$0x3] %vm402_vm6, %v399_v43 }
 0x8d4   : > { %868 = vst.msk [vmem:[%s776_s8 + $0x2] sm:$0x3] %vm402_vm6, %v495_v37 }
 0x8d5   : > { %593 = vst.msk [vmem:[%s592_s20] sm:$0x3] %vm402_vm6, %v590_v30 }
 0x941   : > { %v686_v38 = vpop.permute.xlu0 %685 }
 0x942   : > { %879 = vst.msk [vmem:[%s788_s26 + $0x6] sm:$0x3] %vm402_vm6, %v686_v38 }
 0x943   : > { %v692_v39 = vpop.permute.xlu1 %691 }
 0x944   : > { %694 = vst.msk [vmem:[#allocation2] sm:$0x3] %vm402_vm6, %v692_v39 }
 0x945 PF: > { %s13_s16 = sadd.s32 1, %s1002_s16   ;;  %s1204_s12 = smov %s994_s14 }
 0x946   : > { %p10_p8 = scmp.ge.s32.totalorder %s13_s16, 6   ;;  %s1205_s13 = smov %s998_s15 }
 0x947   : > { %s1206_s14 = smov %s1209_s17  ;;  %s1207_s15 = smov %s1213_s18 }
 0x948   :  { %12 = sbr.rel (!%p10_p8) target bundleno = 3 (0x3), region = 77 }

</bundles_post_ra>
